<compile_context>
chip_gen: v5e
topology: v5e:2x2
jax: 0.10.0
libtpu: 0.0.40
codegen_flags: <defaults>
</compile_context>

<pallas_src>
import functools

import jax
import jax.numpy as jnp
from jax import lax
from jax.experimental import pallas as pl
from jax.experimental.pallas import tpu as pltpu

_LANES = 128
_LOGITS_BLOCK_TARGET = 4 << 20   # aim for ~4 MiB of logits per grid step
_MIN_TOTAL_STEPS = 8             # keep both v7x TensorCores fed + pipeline depth


def _vmem_capacity_bytes():
    try:
        return max(int(pltpu.get_tpu_info().vmem_capacity_bytes), 32 << 20)
    except Exception:
        return 64 << 20          # conservative fallback (v7x per-TC physical VMEM)


def _pick_tile_rows(r_total, n, c, logit_bytes, vmem_budget_bytes):
    """Pick rows (of 128 lanes) per grid step.

    Either a multiple of 32 (satisfies the (sublane,128) tiling constraint for
    int8/bf16/f32 blocks) or the full extent r_total.
    """
    row_logits = c * _LANES * logit_bytes
    # 2x double-buffered inputs (logits + int32 worst-case target) + ~8 f32 temps/row.
    row_resident = 2 * (row_logits + _LANES * 4) + 8 * _LANES * 4

    tile = max(1, _LOGITS_BLOCK_TARGET // row_logits)
    tile = min(tile, max(1, vmem_budget_bytes // row_resident))

    # Keep at least ~_MIN_TOTAL_STEPS grid steps overall (N * num_tiles).
    min_tiles = -(-_MIN_TOTAL_STEPS // n)
    if tile * min_tiles > r_total:
        tile = max(1, r_total // min_tiles)

    if tile >= r_total:
        return r_total
    tile = (tile // 32) * 32
    if tile == 0:
        return r_total           # too small to tile cleanly -> single full-extent block
    return tile


def _segm_loss_kernel(logits_ref, target_ref, out_ref, *,
                      num_classes, tile_rows, r_total, mask_rows):
    # logits_ref: (1, C, tile_rows, 128) in original dtype (cast per-slice below)
    # target_ref: (1, 1, tile_rows, 128) int8/int16/int32
    # out_ref:    (1, 1, out_rows, 128) f32 partial sums (unscaled by segm_valid)
    target = target_ref[0, 0].astype(jnp.int32)                    # (R, 128)

    # Pass 1: running max over classes + gather of the target-class logit via
    # compare+select.  Only (R,128) accumulators live; no (C,R,128) temporaries.
    x = logits_ref[0, 0].astype(jnp.float32)
    m = x
    picked = jnp.where(target == 0, x, 0.0)
    for c in range(1, num_classes):
        x = logits_ref[0, c].astype(jnp.float32)
        m = jnp.maximum(m, x)
        picked = jnp.where(target == c, x, picked)

    # Pass 2: sum of exp(logit - max) over classes (re-reads the VMEM tile; cheap).
    s = jnp.exp(logits_ref[0, 0].astype(jnp.float32) - m)
    for c in range(1, num_classes):
        s = s + jnp.exp(logits_ref[0, c].astype(jnp.float32) - m)

    # Per-pixel NLL: log(sum_exp) + max - logit[target].
    # TODO(synk): out-of-range / ignore_index labels silently give loss = logsumexp
    # (PyTorch CrossEntropyLoss would error on them).
    loss = jnp.log(s) + m - picked                                  # (R, 128)

    if mask_rows:
        row = lax.broadcasted_iota(jnp.int32, loss.shape, 0) + pl.program_id(1) * tile_rows
        loss = jnp.where(row < r_total, loss, 0.0)

    r = loss.shape[0]
    if r % 8 == 0 and r > 8:
        # (R,128) -> (R//8, 8, 128) is layout preserving; leading-axis sum is pure
        # VALU vreg adds; the output stays a lane-dense (8,128) block.
        loss = loss.reshape(r // 8, 8, _LANES).sum(axis=0)
    out_ref[0, 0] = loss


def segm_loss(segm_logits, segm_256, segm_valid):
    """segm_logits: (N, C, H, W) float; segm_256: (N, K, H, W) int; segm_valid: (N,)."""
    N, C, H, W = segm_logits.shape
    HW = H * W
    # TODO(synk): pad + in-kernel lane mask if H*W is not a multiple of 128.
    assert HW % _LANES == 0, "H*W must be a multiple of 128"
    r_total = HW // _LANES

    logit_bytes = jnp.dtype(segm_logits.dtype).itemsize
    phys_vmem = _vmem_capacity_bytes()
    input_budget = min(phys_vmem // 2, 48 << 20)

    tile_rows = _pick_tile_rows(r_total, N, C, logit_bytes, input_budget)
    num_tiles = pl.cdiv(r_total, tile_rows)
    mask_rows = (r_total % tile_rows) != 0
    out_rows = 8 if (tile_rows % 8 == 0) else tile_rows

    # Shrink the target stream when the (sublane,128) tiling constraint allows it.
    if C <= 127 and tile_rows % 32 == 0:
        tgt_dtype = jnp.int8
    elif C <= 32767 and tile_rows % 16 == 0:
        tgt_dtype = jnp.int16
    else:
        tgt_dtype = jnp.int32

    # No dtype cast on logits: original (ideally bf16) bytes stream from HBM;
    # reshape (H,W)->(r_total,128) is a contiguity-preserving no-op.
    logits = segm_logits.reshape(N, C, r_total, _LANES)
    target = segm_256[:, 0].reshape(N, 1, r_total, _LANES).astype(tgt_dtype)
    valid = jnp.asarray(segm_valid, jnp.float32).reshape(N)

    tgt_bytes = jnp.dtype(tgt_dtype).itemsize
    block_in = tile_rows * _LANES * (C * logit_bytes + tgt_bytes)
    block_out = out_rows * _LANES * 4
    temps = 10 * tile_rows * _LANES * 4
    needed = 2 * block_in + 2 * block_out + temps + (2 << 20)
    vmem_limit = int(min(phys_vmem * 15 // 16, max(needed, 32 << 20)))

    kernel = functools.partial(
        _segm_loss_kernel, num_classes=C, tile_rows=tile_rows,
        r_total=r_total, mask_rows=mask_rows)

    partials = pl.pallas_call(
        kernel,
        out_shape=jax.ShapeDtypeStruct((N, num_tiles, out_rows, _LANES), jnp.float32),
        grid_spec=pltpu.PrefetchScalarGridSpec(
            num_scalar_prefetch=0,
            grid=(N, num_tiles),
            in_specs=[
                pl.BlockSpec((1, C, tile_rows, _LANES), lambda i, j: (i, 0, j, 0)),
                pl.BlockSpec((1, 1, tile_rows, _LANES), lambda i, j: (i, 0, j, 0)),
            ],
            out_specs=pl.BlockSpec((1, 1, out_rows, _LANES), lambda i, j: (i, j, 0, 0)),
        ),
        compiler_params=pltpu.CompilerParams(
            dimension_semantics=("parallel", "parallel"),
            vmem_limit_bytes=vmem_limit,
        ),
    )(logits, target)

    # Tiny final reduce in plain JAX: per-sample unscaled sums, then apply
    # segm_valid (hoisted out of the kernel) and the global mean.
    per_sample = jnp.sum(partials, axis=(1, 2, 3))                  # (N,)
    total = jnp.sum(per_sample * valid) / jnp.float32(N * HW)
    return total.reshape(-1)                                        # matches .mean().view(-1)


def _reference(segm_logits, segm_256, segm_valid):
    # Pure-JAX reference of the PyTorch forward.
    target = segm_256[:, 0].astype(jnp.int32)                        # (N, H, W)
    logits = segm_logits.astype(jnp.float32)                         # (N, C, H, W)
    logp = jax.nn.log_softmax(logits, axis=1)
    nll = -jnp.take_along_axis(logp, target[:, None], axis=1)[:, 0]  # (N, H, W)
    dist = nll * segm_valid[:, None, None].astype(jnp.float32)
    return dist.mean().reshape(-1)


if __name__ == "__main__":
    # Test 1: small f32 config (single full-extent tile per sample, int32 targets).
    k1, k2, k3 = jax.random.split(jax.random.PRNGKey(0), 3)
    N, C, H, W = 2, 4, 16, 16
    segm_logits = jax.random.normal(k1, (N, C, H, W), dtype=jnp.float32)
    segm_256 = jax.random.randint(k2, (N, 1, H, W), 0, C, dtype=jnp.int32)
    segm_valid = jax.random.bernoulli(k3, 0.75, (N,)).astype(jnp.float32)

    out = jax.block_until_ready(segm_loss(segm_logits, segm_256, segm_valid))
    ref = _reference(segm_logits, segm_256, segm_valid)
    assert out.shape == (1,)
    assert jnp.allclose(out, ref, atol=1e-5, rtol=1e-5), (out, ref)

    # Test 2: bf16 logits + int8 target path with the (rows//8,8,128) partial reduce.
    k4, k5, k6 = jax.random.split(jax.random.PRNGKey(1), 3)
    N2, C2, H2, W2 = 2, 4, 64, 64
    logits_bf16 = jax.random.normal(k4, (N2, C2, H2, W2), dtype=jnp.bfloat16)
    segm2 = jax.random.randint(k5, (N2, 1, H2, W2), 0, C2, dtype=jnp.int32)
    valid2 = jax.random.bernoulli(k6, 0.5, (N2,)).astype(jnp.float32)

    out2 = jax.block_until_ready(segm_loss(logits_bf16, segm2, valid2))
    ref2 = _reference(logits_bf16, segm2, valid2)
    assert out2.shape == (1,)
    assert jnp.allclose(out2, ref2, atol=1e-3, rtol=1e-3), (out2, ref2)

    print("KERNEL_OK")
</pallas_src>

<mosaic_0001>
module attributes {stable_mosaic.version = 11 : i64} {
  func.func @_segm_loss_kernel(%arg0: i32, %arg1: i32, %arg2: memref<1x4x2x128xf32, #tpu.memory_space<vmem>>, %arg3: memref<1x1x2x128xi32, #tpu.memory_space<vmem>>, %arg4: memref<1x1x2x128xf32, #tpu.memory_space<vmem>>) attributes {dimension_semantics = [#tpu.dimension_semantics<parallel>, #tpu.dimension_semantics<parallel>], iteration_bounds = array<i64: 2, 1>, scalar_prefetch = 0 : i64, scratch_operands = 0 : i64, tpu.core_type = #tpu.core_type<tc>, window_params = [{transform_indices = @transform_0, window_bounds = array<i64: 1, 4, 2, 128>}, {transform_indices = @transform_1, window_bounds = array<i64: 1, 1, 2, 128>}, {transform_indices = @transform_2, window_bounds = array<i64: 1, 1, 2, 128>}]} {
    %c0 = arith.constant 0 : index
    %c0_0 = arith.constant 0 : index
    %c0_1 = arith.constant 0 : index
    %c0_2 = arith.constant 0 : index
    %0 = vector.load %arg3[%c0, %c0_0, %c0_1, %c0_2] : memref<1x1x2x128xi32, #tpu.memory_space<vmem>>, vector<1x1x2x128xi32>
    %1 = vector.shape_cast %0 : vector<1x1x2x128xi32> to vector<2x128xi32>
    %c0_3 = arith.constant 0 : index
    %c0_4 = arith.constant 0 : index
    %c0_5 = arith.constant 0 : index
    %c0_6 = arith.constant 0 : index
    %2 = vector.load %arg2[%c0_3, %c0_4, %c0_5, %c0_6] : memref<1x4x2x128xf32, #tpu.memory_space<vmem>>, vector<1x1x2x128xf32>
    %3 = vector.shape_cast %2 : vector<1x1x2x128xf32> to vector<2x128xf32>
    %c0_i32 = arith.constant 0 : i32
    %4 = vector.broadcast %c0_i32 : i32 to vector<2x128xi32>
    %5 = arith.cmpi eq, %1, %4 : vector<2x128xi32>
    %cst = arith.constant 0.000000e+00 : f32
    %6 = vector.broadcast %cst : f32 to vector<2x128xf32>
    %7 = arith.select %5, %3, %6 : vector<2x128xi1>, vector<2x128xf32>
    %c0_7 = arith.constant 0 : index
    %c1 = arith.constant 1 : index
    %c0_8 = arith.constant 0 : index
    %c0_9 = arith.constant 0 : index
    %8 = vector.load %arg2[%c0_7, %c1, %c0_8, %c0_9] : memref<1x4x2x128xf32, #tpu.memory_space<vmem>>, vector<1x1x2x128xf32>
    %9 = vector.shape_cast %8 : vector<1x1x2x128xf32> to vector<2x128xf32>
    %10 = arith.maximumf %3, %9 : vector<2x128xf32>
    %c1_i32 = arith.constant 1 : i32
    %11 = vector.broadcast %c1_i32 : i32 to vector<2x128xi32>
    %12 = arith.cmpi eq, %1, %11 : vector<2x128xi32>
    %13 = arith.select %12, %9, %7 : vector<2x128xi1>, vector<2x128xf32>
    %c0_10 = arith.constant 0 : index
    %c2 = arith.constant 2 : index
    %c0_11 = arith.constant 0 : index
    %c0_12 = arith.constant 0 : index
    %14 = vector.load %arg2[%c0_10, %c2, %c0_11, %c0_12] : memref<1x4x2x128xf32, #tpu.memory_space<vmem>>, vector<1x1x2x128xf32>
    %15 = vector.shape_cast %14 : vector<1x1x2x128xf32> to vector<2x128xf32>
    %16 = arith.maximumf %10, %15 : vector<2x128xf32>
    %c2_i32 = arith.constant 2 : i32
    %17 = vector.broadcast %c2_i32 : i32 to vector<2x128xi32>
    %18 = arith.cmpi eq, %1, %17 : vector<2x128xi32>
    %19 = arith.select %18, %15, %13 : vector<2x128xi1>, vector<2x128xf32>
    %c0_13 = arith.constant 0 : index
    %c3 = arith.constant 3 : index
    %c0_14 = arith.constant 0 : index
    %c0_15 = arith.constant 0 : index
    %20 = vector.load %arg2[%c0_13, %c3, %c0_14, %c0_15] : memref<1x4x2x128xf32, #tpu.memory_space<vmem>>, vector<1x1x2x128xf32>
    %21 = vector.shape_cast %20 : vector<1x1x2x128xf32> to vector<2x128xf32>
    %22 = arith.maximumf %16, %21 : vector<2x128xf32>
    %c3_i32 = arith.constant 3 : i32
    %23 = vector.broadcast %c3_i32 : i32 to vector<2x128xi32>
    %24 = arith.cmpi eq, %1, %23 : vector<2x128xi32>
    %25 = arith.select %24, %21, %19 : vector<2x128xi1>, vector<2x128xf32>
    %c0_16 = arith.constant 0 : index
    %c0_17 = arith.constant 0 : index
    %c0_18 = arith.constant 0 : index
    %c0_19 = arith.constant 0 : index
    %26 = vector.load %arg2[%c0_16, %c0_17, %c0_18, %c0_19] : memref<1x4x2x128xf32, #tpu.memory_space<vmem>>, vector<1x1x2x128xf32>
    %27 = vector.shape_cast %26 : vector<1x1x2x128xf32> to vector<2x128xf32>
    %28 = arith.subf %27, %22 : vector<2x128xf32>
    %29 = math.exp %28 : vector<2x128xf32>
    %c0_20 = arith.constant 0 : index
    %c1_21 = arith.constant 1 : index
    %c0_22 = arith.constant 0 : index
    %c0_23 = arith.constant 0 : index
    %30 = vector.load %arg2[%c0_20, %c1_21, %c0_22, %c0_23] : memref<1x4x2x128xf32, #tpu.memory_space<vmem>>, vector<1x1x2x128xf32>
    %31 = vector.shape_cast %30 : vector<1x1x2x128xf32> to vector<2x128xf32>
    %32 = arith.subf %31, %22 : vector<2x128xf32>
    %33 = math.exp %32 : vector<2x128xf32>
    %34 = arith.addf %29, %33 : vector<2x128xf32>
    %c0_24 = arith.constant 0 : index
    %c2_25 = arith.constant 2 : index
    %c0_26 = arith.constant 0 : index
    %c0_27 = arith.constant 0 : index
    %35 = vector.load %arg2[%c0_24, %c2_25, %c0_26, %c0_27] : memref<1x4x2x128xf32, #tpu.memory_space<vmem>>, vector<1x1x2x128xf32>
    %36 = vector.shape_cast %35 : vector<1x1x2x128xf32> to vector<2x128xf32>
    %37 = arith.subf %36, %22 : vector<2x128xf32>
    %38 = math.exp %37 : vector<2x128xf32>
    %39 = arith.addf %34, %38 : vector<2x128xf32>
    %c0_28 = arith.constant 0 : index
    %c3_29 = arith.constant 3 : index
    %c0_30 = arith.constant 0 : index
    %c0_31 = arith.constant 0 : index
    %40 = vector.load %arg2[%c0_28, %c3_29, %c0_30, %c0_31] : memref<1x4x2x128xf32, #tpu.memory_space<vmem>>, vector<1x1x2x128xf32>
    %41 = vector.shape_cast %40 : vector<1x1x2x128xf32> to vector<2x128xf32>
    %42 = arith.subf %41, %22 : vector<2x128xf32>
    %43 = math.exp %42 : vector<2x128xf32>
    %44 = arith.addf %39, %43 : vector<2x128xf32>
    %45 = math.log %44 : vector<2x128xf32>
    %46 = arith.addf %45, %22 : vector<2x128xf32>
    %47 = arith.subf %46, %25 : vector<2x128xf32>
    %c0_32 = arith.constant 0 : index
    %c0_33 = arith.constant 0 : index
    %c0_34 = arith.constant 0 : index
    %c0_35 = arith.constant 0 : index
    %48 = vector.load %arg4[%c0_32, %c0_33, %c0_34, %c0_35] : memref<1x1x2x128xf32, #tpu.memory_space<vmem>>, vector<1x1x2x128xf32>
    %49 = vector.shape_cast %48 : vector<1x1x2x128xf32> to vector<2x128xf32>
    %50 = vector.shape_cast %47 : vector<2x128xf32> to vector<1x1x2x128xf32>
    tpu.vector_store %arg4[%c0_32, %c0_33, %c0_34, %c0_35], %50 {strides = array<i32>} : memref<1x1x2x128xf32, #tpu.memory_space<vmem>>, vector<1x1x2x128xf32>,
    return
  }
  func.func @transform_0(%arg0: i32, %arg1: i32) -> (i32, i32, i32, i32) {
    %c0_i32 = arith.constant 0 : i32
    %c0_i32_0 = arith.constant 0 : i32
    %c0_i32_1 = arith.constant 0 : i32
    return %arg0, %c0_i32, %arg1, %c0_i32_0 : i32, i32, i32, i32
  }
  func.func @transform_1(%arg0: i32, %arg1: i32) -> (i32, i32, i32, i32) {
    %c0_i32 = arith.constant 0 : i32
    %c0_i32_0 = arith.constant 0 : i32
    %c0_i32_1 = arith.constant 0 : i32
    return %arg0, %c0_i32, %arg1, %c0_i32_0 : i32, i32, i32, i32
  }
  func.func @transform_2(%arg0: i32, %arg1: i32) -> (i32, i32, i32, i32) {
    %c0_i32 = arith.constant 0 : i32
    %c0_i32_0 = arith.constant 0 : i32
    %c0_i32_1 = arith.constant 0 : i32
    return %arg0, %arg1, %c0_i32, %c0_i32_0 : i32, i32, i32, i32
  }
}

</mosaic_0001>

<bundles_post_ra>
// kernel: tpu_custom_call.1
= control target key start
LH: loop header
LB: loop body
LE: loop exit
PB: predicated region body
PF: predicated region fallthrough
CT: control target
= control target key end

     0   :  { %7 = vsyncpa [#allocation3], 0  ;;  %s791_s0 = inlined_call_operand.hbm [shape: f32[2,4,2,128], index: 0, kind: input, shape index: {}]   ;;  %s792_s1 = inlined_call_operand.hbm [shape: s32[2,1,2,128], index: 1, kind: input, shape index: {}]   ;;  %s793_s2 = inlined_call_operand.hbm [shape: f32[2,1,2,128], index: 2, kind: output, shape index: {}]  }
   0x1   :  { %9 = vsyncpa [#allocation3 + $0x1], 0 }
   0x2   :  { %10 = vsyncpa [#allocation6], 0 }
   0x3   :  { %12 = vsyncpa [#allocation6 + $0x1], 0 }
   0x4   :  { %13 = vsyncpa [#allocation4], 0 }
   0x5   :  { %15 = vsyncpa [#allocation4 + $0x1], 0  ;;  %s649_s9 = smov 0   ;;  %s651_s10 = smov 0  }
   0x6   :  { %s653_s11 = smov 0   ;;  %s655_s12 = smov 0  }
   0x7   :  { %s657_s13 = smov 0   ;;  %s659_s14 = smov 0  }
   0x8 LB: > { %s384_s15 = sadd.s32 4294967295, %s630_s14   ;;  %s385_s16 = sadd.s32 4294967294, %s630_s14   ;;  %s630_s14 = sphi %s659_s14, %s21_s14   ;;  %s626_s13 = sphi %s657_s13, %s803_s13   ;;  %s622_s12 = sphi %s655_s12, %s802_s12   ;;  %s618_s11 = sphi %s653_s11, %s801_s11   ;;  %s614_s10 = sphi %s651_s10, %s800_s10   ;;  %s610_s9 = sphi %s649_s9, %s799_s9  }
   0x9   : > { %s33_s17 = sadd.s32 1, %s626_s13  ;;  %s42_s18 = sadd.s32 1, %s618_s11 }
   0xa   : > { %p35_p0 = scmp.ge.s32.totalorder %s33_s17, 2  ;;  %p49_p1 = scmp.ne.s32.totalorder %s618_s11, %s614_s10 }
   0xb   : > { %p50_p2 = scmp.eq.s32.totalorder %s630_s14, 0  ;;  %p55_p3 = scmp.ne.s32.totalorder %s614_s10, %s610_s9 }
   0xc   : > { %s805_s17 = smov (%p35_p0, %s33_s17), 0  ;;  %p56_p5 = scmp.eq.s32.totalorder %s384_s15, 0 }
   0xd   : > { %p690_p4 = por %p50_p2, %p49_p1  ;;  %s37_s20 = ssub.s32 %s626_s13, %s805_s17 }
   0xe   : > { %p109_p6 = scmp.eq.s32.totalorder %s384_s15, 1  ;;  %p40_p7 = scmp.eq.s32.totalorder %s37_s20, 0 }
   0xf   : > { %p696_p8 = por %p56_p5, %p55_p3  ;;  %p115_p10 = scmp.eq.s32.totalorder %s385_s16, 1 }
  0x10   : > { %p700_p9 = por %p109_p6, %p49_p1  ;;  %p387_p12 = scmp.ge.s32.totalorder %s630_s14, 2 }
  0x11   : > { %s705_s23 = scalar_select %p40_p7, %s618_s11, %s42_s18  }
  0x12   : > { %p707_p11 = por %p115_p10, %p55_p3  ;;  %p422_p13 = scmp.lt.s32.totalorder %s630_s14, 2 }
  0x13   : > { %s135_s25 = sand.u32 1, %s618_s11   ;;  %s404_s27 = sshll.u32 %s626_s13, 3 }
  0x14   : > { %s388_s26 = sshll.u32 %s135_s25, 3  ;;  %s145_s30 = scalar_lea.hbm %s791_s0, %s404_s27 }
  0x15   : > { %s139_s3 = scalar_lea.vmem [#allocation2], %s388_s26  ;;  %s146_s5 = sshll.u32 %s145_s30, 4  ;;  %s147_s5 = int_to_ptr.hbm [resolvable:$true] %s146_s5 }
  0x16   : > { %s148_s4 = sshll.u32 %s139_s3, 4  ;;  %p720_p0 = pnand %p422_p13, %p690_p4  ;;  %s149_s4 = int_to_ptr.vmem [resolvable:$true] %s148_s4 }
  0x17   : > { %p393_p1 = scmp.ge.s32.totalorder %s630_s14, 1  ;;  %s136_s7 = scalar_lea.sflag [#allocation3], %s135_s25 }
  0x18   : > { %s632_s8 = smov 32   ;;  %s633_s15 = smov 2  }
  0x19   : > { %414 = dma.hbm_to_vmem [thread:$0]  (!%p720_p0), %s147_s5, 128, %s149_s4, %s136_s7, %s632_s8, %s632_s8, %s633_s15  }
  0x1a   : > { %p176_p2 = scmp.lt.s32.totalorder %s630_s14, 3  ;;  %s391_s16 = sshll.u32 %s135_s25, 1 }
  0x1b   : > { %s392_s18 = sshll.u32 %s626_s13, 1  ;;  %s162_s27 = scalar_lea.vmem [#allocation5], %s391_s16 }
  0x1c   : > { %p177_p3 = pnand %p393_p1, %p176_p2  ;;  %s167_s19 = scalar_lea.hbm %s792_s1, %s392_s18 }
  0x1d   : > { %s171_s28 = sshll.u32 %s162_s27, 4  ;;  %s169_s29 = sshll.u32 %s167_s19, 4  ;;  %s172_s28 = int_to_ptr.vmem [resolvable:$true] %s171_s28  ;;  %s170_s29 = int_to_ptr.hbm [resolvable:$true] %s169_s29 }
  0x1e   : > { %s159_s30 = scalar_lea.sflag [#allocation6], %s135_s25  ;;  %180 = sbr.rel (%p177_p3) target bundleno = 80 (0x50), region = 28 }
  0x1f   : > { %417 = dma.hbm_to_vmem [thread:$0]  (!%p720_p0), %s170_s29, 32, %s172_s28, %s159_s30  }
  0x20   : > { %s735_s3 = sand.u32 (!%p177_p3), 1, %s614_s10  }
  0x21   : > { %s394_s4 = sshll.u32 (!%p177_p3), %s735_s3, 3  ;;  %s183_s5 = scalar_lea.sflag (!%p177_p3), [#allocation3], %s735_s3 }
  0x22   : > { %s186_s7 = scalar_lea.vmem (!%p177_p3), [#allocation2], %s394_s4 }
  0x23   : > { %597 = dma.done.wait (%p696_p8), %s183_s5, 128  }
  0x24   : > { %599 = vsyncadd (%p696_p8), %s183_s5, 4294967168  ;;  %s395_s25 = sshll.u32 %s735_s3, 1  ;;  %s193_s6 = scalar_lea.sflag [#allocation6], %s735_s3 }
  0x25   : > { %s196_s8 = scalar_lea.vmem [#allocation5], %s395_s25 }
  0x26   : > { %601 = dma.done.wait (%p696_p8), %s193_s6, 32  }
  0x27   : > { %603 = vsyncadd (%p696_p8), %s193_s6, 4294967264  ;;  %v224_v0 = vld [vmem:[%s186_s7] sm:$0x3]  ;;  %v397_v1 = vld [vmem:[%s186_s7 + $0x2] sm:$0x3]  ;;  %s401_s21 = sshll.u32 %s622_s12, 1 }
  0x28   : > { %v229_v2 = vmax.f32 %v224_v0, %v397_v1  ;;  %v398_v3 = vld [vmem:[%s186_s7 + $0x4] sm:$0x3]  ;;  %v399_v4 = vld [vmem:[%s186_s7 + $0x6] sm:$0x3]  ;;  %v223_v17 = vld [vmem:[%s196_s8] sm:$0x3]  ;;  %s274_s18 = scalar_lea.hbm %s793_s2, %s401_s21 }
  0x29   : > { %vm225_vm0 = vcmp.eq.s32.totalorder %v223_v17, 0  ;;  %vm230_vm1 = vcmp.eq.s32.totalorder %v223_v17, 1  ;;  %vm235_vm2 = vcmp.eq.s32.totalorder %v223_v17, 2  ;;  %vm240_vm3 = vcmp.eq.s32.totalorder %v223_v17, 3  ;;  %s222_s20 = scalar_lea.vmem [#allocation7], %s395_s25  ;;  %s278_s19 = sshll.u32 %s274_s18, 4  ;;  %s279_s19 = int_to_ptr.hbm [resolvable:$true] %s278_s19 }
  0x2a   : > { %v234_v5 = vmax.f32 %v229_v2, %v398_v3  ;;  %v226_v23 = vsel %vm225_vm0, %v224_v0, 0.0  ;;  %s276_s26 = sshll.u32 %s222_s20, 4  ;;  %s263_s12 = scalar_lea.sflag [#allocation4], %s735_s3  ;;  %s277_s26 = int_to_ptr.vmem [resolvable:$true] %s276_s26 }
  0x2b   : > { %v231_v24 = vsel %vm230_vm1, %v397_v1, %v226_v23  ;;  %s558_s27 = sshra.s32 %s279_s19, 4  ;;  %s564_s4 = scalar_lea.hbm %s793_s2, 4  ;;  %s559_s27 = int_to_ptr.hbm [resolvable:$true] %s558_s27 }
  0x2c   : > { %v239_v6 = vmax.f32 %v234_v5, %v399_v4  ;;  %v236_v25 = vsel %vm235_vm2, %v398_v3, %v231_v24  ;;  %s560_s28 = scalar_lea.hbm %s559_s27, 2  ;;  %p565_p7 = scmp.lt.s32.totalorder %s559_s27, %s793_s2 }
  0x2d   : > { %v241_v28 = vsel %vm240_vm3, %v399_v4, %v236_v25  ;;  %p561_p4 = scmp.ne.s32.totalorder %s559_s27, %s560_s28  ;;  %p566_p8 = scmp.lt.s32.totalorder %s564_s4, %s560_s28 }
  0x2e   : > { %v242_v7 = vsub.f32 %v224_v0, %v239_v6  ;;  %v245_v8 = vsub.f32 %v397_v1, %v239_v6  ;;  %v249_v9 = vsub.f32 %v398_v3, %v239_v6  ;;  %v253_v10 = vsub.f32 %v399_v4, %v239_v6 }
  0x2f   : > { %p562_p5 = pnand %p561_p4, %p700_p9  ;;  %p567_p10 = por %p566_p8, %p565_p7 }
  0x30   : > { %v243_v11 = vmul.f32 1.442695, %v242_v7  ;;  %v246_v12 = vmul.f32 1.442695, %v245_v8  ;;  %v250_v13 = vmul.f32 1.442695, %v249_v9 }
  0x31   : > { %v254_v14 = vmul.f32 1.442695, %v253_v10  ;;  %p563_p6 = pneg %p562_p5 }
  0x32   : > { %474 = vpow2.f32 %v243_v11 }
  0x33   : > { %476 = vpow2.f32 %v246_v12  ;;  %p568_p13 = pnand %p567_p10, %p563_p6 }
  0x34   : > { %478 = vpow2.f32 %v250_v13 }
  0x35   : > { %480 = vpow2.f32 %v254_v14 }
  0x38   : > { %v475_v15 = vpop.eup %474 }
  0x39   : > { %v477_v16 = vpop.eup %476 }
  0x3a   : > { %v479_v18 = vpop.eup %478  ;;  %v248_v19 = vadd.f32 %v477_v16, %v475_v15 }
  0x3b   : > { %v481_v20 = vpop.eup %480 }
  0x3c   : > { %v252_v21 = vadd.f32 %v479_v18, %v248_v19 }
  0x3e   : > { %v256_v22 = vadd.f32 %v481_v20, %v252_v21 }
  0x40   : > { %482 = vlog2.f32 %v256_v22 }
  0x46   : > { %v483_v26 = vpop.eup %482 }
  0x47   : > { %v258_v27 = vmul.f32 0.6931472, %v483_v26 }
  0x49   : > { %v259_v29 = vadd.f32 %v258_v27, %v239_v6 }
  0x4b   : > { %v260_v30 = vsub.f32 %v259_v29, %v241_v28 }
  0x4d   : > { %261 = vst [vmem:[%s222_s20] sm:$0x3] %v260_v30 }
  0x4e   : > { %571 = shalt.err (!%p568_p13)
}
  0x4f   : > { %409 = dma.vmem_to_hbm [thread:$0]  (%p700_p9), %s277_s26, 32, %s279_s19, %s263_s12  }
  0x50 PF: > { %s290_s3 = sand.u32 1, %s610_s9   ;;  %p419_p0 = pnand %p387_p12, %p707_p11 }
  0x51   : > { %s291_s25 = scalar_lea.sflag [#allocation4], %s290_s3 }
  0x52   : > { %p420_p1 = pneg %p419_p0 }
  0x54   : > { %605 = dma.done.wait (%p420_p1), %s291_s25, 32  }
  0x55   : > { %607 = vsyncadd (%p420_p1), %s291_s25, 4294967264  ;;  %s21_s14 = sadd.s32 1, %s630_s14   ;;  %s799_s9 = smov %s614_s10 }
  0x56   : > { %p18_p2 = scmp.ge.s32.totalorder %s21_s14, 4   ;;  %s800_s10 = smov %s618_s11 }
  0x57   : > { %s801_s11 = smov %s705_s23  ;;  %s802_s12 = smov %s626_s13 }
  0x58   : > { %s803_s13 = smov %s805_s17  ;;  %20 = sbr.rel (!%p18_p2) target bundleno = 8 (0x8), region = 89 }
  0x5d   :  { %297 = vsyncpa [#allocation3], 1 }
  0x5e   :  { %299 = vsyncpa [#allocation3 + $0x1], 1 }
  0x5f   :  { %300 = vsyncpa [#allocation6], 1 }
  0x60   :  { %302 = vsyncpa [#allocation6 + $0x1], 1 }
  0x61   :  { %303 = vsyncpa [#allocation4], 1 }
  0x62   :  { %305 = vsyncpa [#allocation4 + $0x1], 1 }

</bundles_post_ra>
